<compile_context>
chip_gen: v7x
topology: tpu7x:2x2x1
jax: 0.10.0
libtpu: 0.0.40
codegen_flags: <defaults>
</compile_context>

<pallas_src>
import math
import functools

import jax
import jax.numpy as jnp
from jax.experimental import pallas as pl
from jax.experimental.pallas import tpu as pltpu

# ----------------------------- small synthetic config -----------------------------
B = 2            # batch
C = 4            # latent channels
F = 4            # video_length (frames)
H = W = 8        # spatial
P = F * H * W    # flattened pixels per batch item  (= 256)
TP = 128         # P-tile (lane axis); biggest tile that fits VMEM at real sizes
SEQ = 8          # prompt tokens
TXT = 32         # prompt embedding dim
T_IN = 32        # unet.time_proj sinusoidal channels
T_EMB = 64       # unet.time_embedding output dim
HID = 64         # stub-UNet hidden width
NUM_TRAIN_TIMESTEPS = 1000
RESOLUTION = 512

assert P % TP == 0, "P must be a multiple of the P-tile (pad or mask otherwise)"

# DDPM scaled_linear schedule (as in the SDXL noise_scheduler), prediction_type='epsilon'
_betas = jnp.linspace(0.00085 ** 0.5, 0.012 ** 0.5, NUM_TRAIN_TIMESTEPS, dtype=jnp.float32) ** 2
ALPHAS_CUMPROD = jnp.cumprod(1.0 - _betas)


# ------------------ fused kernel: NaN-clean + add_noise + stub-UNet + MSE ----------
def _fused_kernel(sa_ref, sb_ref,                 # SMEM scalars, shape (B,)
                  lat_ref, noise_ref,             # VMEM (B, C, TP)
                  w_in_t_ref,                     # VMEM (HID, C)    conv_in^T
                  film_t_ref,                     # VMEM (HID, B)    (b_in + temb@w_t)^T
                  w_out_t_ref,                    # VMEM (C, HID)    conv_out^T
                  b_out_ref,                      # VMEM (C, 1)
                  loss_ref,                       # SMEM (1, 1) output: sum of squared err
                  acc_ref):                       # SMEM (1, 1) scratch accumulator
    i = pl.program_id(0)

    @pl.when(i == 0)
    def _():
        acc_ref[0, 0] = 0.0

    w_in_t = w_in_t_ref[...]      # (HID, C)
    w_out_t = w_out_t_ref[...]    # (C, HID)
    b_out = b_out_ref[...]        # (C, 1)

    total = jnp.float32(0.0)
    # B is tiny and static -> unroll; avoids a per-batch grid axis (600-cycle steps).
    for b in range(B):
        x = lat_ref[b]                                      # (C, TP)  pixels on lanes
        nz = noise_ref[b]                                   # (C, TP)
        # "NaN found in latents, replacing with zeros"
        x = jnp.where(jnp.isnan(x), jnp.zeros_like(x), x)
        # noise_scheduler.add_noise: sqrt(acp[t])*x + sqrt(1-acp[t])*noise
        noisy = sa_ref[b] * x + sb_ref[b] * nz              # (C, TP)

        # conv_in(1x1) with the time-FiLM projection folded into a per-batch bias column
        h = jnp.dot(w_in_t, noisy, preferred_element_type=jnp.float32)   # (HID, TP)
        h = h + film_t_ref[:, pl.ds(b, 1)]                               # (HID, 1) bcast
        h = h * jax.nn.sigmoid(h)                                        # SiLU
        # conv_out(1x1)
        pred = jnp.dot(w_out_t, h, preferred_element_type=jnp.float32) + b_out  # (C, TP)

        # prediction_type == 'epsilon' -> target = noise; accumulate squared error
        d = pred - nz
        total = total + jnp.sum(d * d)

    # Grid axis is a reduction ("arbitrary" / sequential): safe to accumulate in SMEM.
    acc_ref[0, 0] = acc_ref[0, 0] + total

    @pl.when(i == pl.num_programs(0) - 1)
    def _():
        loss_ref[0, 0] = acc_ref[0, 0]


def fused_forward_sqsum(lat_bcp, noise_bcp, sa, sb, w_in_t, film_t, w_out_t, b_out_t):
    """Returns sum((pred - noise)^2) over all B*C*P elements."""
    n_tiles = P // TP
    sq_sum = pl.pallas_call(
        _fused_kernel,
        grid=(n_tiles,),
        in_specs=[
            pl.BlockSpec(memory_space=pltpu.MemorySpace.SMEM),      # sqrt(acp)      (B,)
            pl.BlockSpec(memory_space=pltpu.MemorySpace.SMEM),      # sqrt(1-acp)    (B,)
            pl.BlockSpec((B, C, TP), lambda i: (0, 0, i)),          # latents  (B, C, P)
            pl.BlockSpec((B, C, TP), lambda i: (0, 0, i)),          # noise    (B, C, P)
            pl.BlockSpec((HID, C), lambda i: (0, 0)),               # w_in^T
            pl.BlockSpec((HID, B), lambda i: (0, 0)),               # film bias^T
            pl.BlockSpec((C, HID), lambda i: (0, 0)),               # w_out^T
            pl.BlockSpec((C, 1), lambda i: (0, 0)),                 # b_out^T
        ],
        out_specs=pl.BlockSpec(memory_space=pltpu.MemorySpace.SMEM),
        out_shape=jax.ShapeDtypeStruct((1, 1), jnp.float32),
        scratch_shapes=[pltpu.SMEM((1, 1), jnp.float32)],
        # Reduction over P-tiles with a persistent accumulator -> must stay "arbitrary"
        # (do NOT flip to "parallel" for v7x megacore; the accumulation would race).
        compiler_params=pltpu.CompilerParams(dimension_semantics=("arbitrary",)),
    )(sa, sb, lat_bcp, noise_bcp, w_in_t, film_t, w_out_t, b_out_t)
    return sq_sum[0, 0]


# ----------------------------- JAX glue -------------------------------------------
def time_proj_sinusoidal(timesteps, dim=T_IN):
    # diffusers Timesteps(dim, flip_sin_to_cos=True, downscale_freq_shift=0)
    half = dim // 2
    exponent = -math.log(10000.0) * jnp.arange(half, dtype=jnp.float32) / half
    emb = timesteps.astype(jnp.float32)[:, None] * jnp.exp(exponent)[None, :]
    return jnp.concatenate([jnp.cos(emb), jnp.sin(emb)], axis=-1)


def get_add_time_ids(original_size, crops_coords_top_left, target_size, dtype):
    ids = list(original_size) + list(crops_coords_top_left) + list(target_size)
    return jnp.array([ids], dtype=dtype)


def init_params(key):
    ks = jax.random.split(key, 8)
    s = 0.02
    return {
        # unet.time_embedding: Linear(T_IN, T_EMB) -> SiLU -> Linear(T_EMB, T_EMB)
        "te_w1": s * jax.random.normal(ks[0], (T_IN, T_EMB), jnp.float32),
        "te_b1": jnp.zeros((1, T_EMB), jnp.float32),
        "te_w2": s * jax.random.normal(ks[1], (T_EMB, T_EMB), jnp.float32),
        "te_b2": jnp.zeros((1, T_EMB), jnp.float32),
        # stub UNet
        "u_w_in": s * jax.random.normal(ks[2], (C, HID), jnp.float32),
        "u_b_in": jnp.zeros((1, HID), jnp.float32),
        "u_w_t": s * jax.random.normal(ks[3], (T_EMB, HID), jnp.float32),
        "u_w_out": s * jax.random.normal(ks[4], (HID, C), jnp.float32),
        "u_b_out": jnp.zeros((1, C), jnp.float32),
    }


def forward(batch, params, key, resolution=RESOLUTION, snr_gamma=None):
    latents = batch["video"]                       # (B, C, F, H, W) — PyTorch NCFHW
    prompt_embeds = batch["prompt_embeds"]         # (B, SEQ, TXT)
    pooled_prompt_embeds = batch["pooled_prompt_embeds"]  # (B, TXT)
    clip_emb = batch["clip_emb"]                   # (B, 4, TXT)
    face_id_embed = batch["faces_id"]              # (B, 1, TXT)

    k_noise, k_t = jax.random.split(key)
    noise = jax.random.normal(k_noise, latents.shape, latents.dtype)      # torch.randn_like
    timesteps = jax.random.randint(k_t, (B,), 0, NUM_TRAIN_TIMESTEPS)     # torch.randint

    # lane-dense layout for the fused kernel: pixels (F*H*W) on the lane axis
    lat_bcp = latents.reshape(B, C, P)
    noise_bcp = noise.reshape(B, C, P)

    acp = ALPHAS_CUMPROD[timesteps]
    sa = jnp.sqrt(acp).astype(jnp.float32)         # (B,)  SMEM scalars
    sb = jnp.sqrt(1.0 - acp).astype(jnp.float32)   # (B,)

    # SDXL added conditioning (consumed by the real UNet; built here for fidelity)
    add_time_ids = get_add_time_ids((resolution, resolution), (0, 0),
                                    (resolution, resolution), prompt_embeds.dtype)
    add_time_ids = jnp.tile(add_time_ids, (B, 1))
    added_cond_kwargs = {"text_embeds": pooled_prompt_embeds,
                         "time_ids": add_time_ids,
                         "image_embeds": [clip_emb, face_id_embed]}
    del added_cond_kwargs  # TODO(synk): only the real UNetMotionModel consumes these.

    # t_emb = unet.time_embedding(unet.time_proj(timesteps)) — tiny, stays in plain JAX
    t_sin = time_proj_sinusoidal(timesteps, T_IN)                         # (B, T_IN)
    h = t_sin @ params["te_w1"] + params["te_b1"]
    h = h * jax.nn.sigmoid(h)                                             # SiLU
    t_emb = h @ params["te_w2"] + params["te_b2"]                         # (B, T_EMB)

    # fold conv_in bias + time-FiLM projection into a single per-batch bias column
    film = params["u_b_in"] + t_emb @ params["u_w_t"]                     # (B, HID)
    film_t = film.T                                                       # (HID, B)

    # transposed weights so the matmul result keeps pixels on the lane axis
    w_in_t = params["u_w_in"].T        # (HID, C)
    w_out_t = params["u_w_out"].T      # (C, HID)
    b_out_t = params["u_b_out"].T      # (C, 1)

    sq_sum = fused_forward_sqsum(lat_bcp, noise_bcp, sa, sb,
                                 w_in_t, film_t, w_out_t, b_out_t)
    # prediction_type == 'epsilon', snr_gamma is None -> plain mean MSE
    loss = sq_sum / (B * C * P)
    return {"denoise_loss": loss}


forward_jit = jax.jit(functools.partial(forward, resolution=RESOLUTION, snr_gamma=None))


# ----------------------------- main ------------------------------------------------
if __name__ == "__main__":
    key = jax.random.PRNGKey(0)
    k_params, k_lat, k_pe, k_pp, k_clip, k_face, k_fwd = jax.random.split(key, 7)

    params = init_params(k_params)

    latents = jax.random.normal(k_lat, (B, C, F, H, W), jnp.float32)
    # exercise the NaN-replacement branch of the forward
    latents = latents.at[0, 0, 0, 0, 0].set(jnp.nan)

    batch = {
        "video": latents,
        "prompt_embeds": jax.random.normal(k_pe, (B, SEQ, TXT), jnp.float32),
        "pooled_prompt_embeds": jax.random.normal(k_pp, (B, TXT), jnp.float32),
        "clip_emb": jax.random.normal(k_clip, (B, 4, TXT), jnp.float32),
        "faces_id": jax.random.normal(k_face, (B, 1, TXT), jnp.float32),
    }

    out = forward_jit(batch, params, k_fwd)
    loss = jax.block_until_ready(out["denoise_loss"])
    assert jnp.isfinite(loss), f"non-finite loss: {loss}"
    print("KERNEL_OK")
</pallas_src>

<mosaic_0001>
module attributes {stable_mosaic.version = 11 : i64} {
  func.func @_fused_kernel(%arg0: i32, %arg1: memref<2xf32, #tpu.memory_space<smem>>, %arg2: memref<2xf32, #tpu.memory_space<smem>>, %arg3: memref<2x4x128xf32, #tpu.memory_space<vmem>>, %arg4: memref<2x4x128xf32, #tpu.memory_space<vmem>>, %arg5: memref<64x4xf32, #tpu.memory_space<vmem>>, %arg6: memref<64x2xf32, #tpu.memory_space<vmem>>, %arg7: memref<4x64xf32, #tpu.memory_space<vmem>>, %arg8: memref<4x1xf32, #tpu.memory_space<vmem>>, %arg9: memref<1x1xf32, #tpu.memory_space<smem>>, %arg10: memref<1x1xf32, #tpu.memory_space<smem>>) attributes {dimension_semantics = [#tpu.dimension_semantics<arbitrary>], iteration_bounds = array<i64: 2>, scalar_prefetch = 0 : i64, scratch_operands = 1 : i64, tpu.core_type = #tpu.core_type<tc>, window_params = [{transform_indices = @transform_0, window_bounds = array<i64: 2>}, {transform_indices = @transform_1, window_bounds = array<i64: 2>}, {transform_indices = @transform_2, window_bounds = array<i64: 2, 4, 128>}, {transform_indices = @transform_3, window_bounds = array<i64: 2, 4, 128>}, {pipeline_mode = #tpu.pipeline_mode<synchronous>, transform_indices = @transform_4, window_bounds = array<i64: 64, 4>}, {pipeline_mode = #tpu.pipeline_mode<synchronous>, transform_indices = @transform_5, window_bounds = array<i64: 64, 2>}, {pipeline_mode = #tpu.pipeline_mode<synchronous>, transform_indices = @transform_6, window_bounds = array<i64: 4, 64>}, {pipeline_mode = #tpu.pipeline_mode<synchronous>, transform_indices = @transform_7, window_bounds = array<i64: 4, 1>}, {transform_indices = @transform_8, window_bounds = array<i64: 1, 1>}]} {
    %c0_i32 = arith.constant 0 : i32
    %0 = arith.cmpi eq, %arg0, %c0_i32 : i32
    %1 = arith.extui %0 : i1 to i32
    %c0_i32_0 = arith.constant 0 : i32
    %2 = arith.cmpi ne, %1, %c0_i32_0 : i32
    scf.if %2 {
      %cst_40 = arith.constant 0.000000e+00 : f32
      %c0_41 = arith.constant 0 : index
      %c0_42 = arith.constant 0 : index
      %80 = memref.load %arg10[%c0_41, %c0_42] : memref<1x1xf32, #tpu.memory_space<smem>>
      memref.store %cst_40, %arg10[%c0_41, %c0_42] : memref<1x1xf32, #tpu.memory_space<smem>>
    } else {
    }
    %c0 = arith.constant 0 : index
    %c0_1 = arith.constant 0 : index
    %3 = vector.load %arg5[%c0, %c0_1] : memref<64x4xf32, #tpu.memory_space<vmem>>, vector<64x4xf32>
    %c0_2 = arith.constant 0 : index
    %c0_3 = arith.constant 0 : index
    %4 = vector.load %arg7[%c0_2, %c0_3] : memref<4x64xf32, #tpu.memory_space<vmem>>, vector<4x64xf32>
    %c0_4 = arith.constant 0 : index
    %c0_5 = arith.constant 0 : index
    %5 = vector.load %arg8[%c0_4, %c0_5] : memref<4x1xf32, #tpu.memory_space<vmem>>, vector<4x1xf32>
    %c0_6 = arith.constant 0 : index
    %c0_7 = arith.constant 0 : index
    %c0_8 = arith.constant 0 : index
    %6 = vector.load %arg3[%c0_6, %c0_7, %c0_8] : memref<2x4x128xf32, #tpu.memory_space<vmem>>, vector<1x4x128xf32>
    %7 = vector.shape_cast %6 : vector<1x4x128xf32> to vector<4x128xf32>
    %c0_9 = arith.constant 0 : index
    %c0_10 = arith.constant 0 : index
    %c0_11 = arith.constant 0 : index
    %8 = vector.load %arg4[%c0_9, %c0_10, %c0_11] : memref<2x4x128xf32, #tpu.memory_space<vmem>>, vector<1x4x128xf32>
    %9 = vector.shape_cast %8 : vector<1x4x128xf32> to vector<4x128xf32>
    %10 = arith.cmpf one, %7, %7 : vector<4x128xf32>
    %cst = arith.constant 0.000000e+00 : f32
    %11 = vector.broadcast %cst : f32 to vector<4x128xf32>
    %12 = arith.select %10, %11, %7 : vector<4x128xi1>, vector<4x128xf32>
    %c0_12 = arith.constant 0 : index
    %13 = memref.load %arg1[%c0_12] : memref<2xf32, #tpu.memory_space<smem>>
    %14 = vector.broadcast %13 : f32 to vector<4x128xf32>
    %15 = arith.mulf %14, %12 : vector<4x128xf32>
    %c0_13 = arith.constant 0 : index
    %16 = memref.load %arg2[%c0_13] : memref<2xf32, #tpu.memory_space<smem>>
    %17 = vector.broadcast %16 : f32 to vector<4x128xf32>
    %18 = arith.mulf %17, %9 : vector<4x128xf32>
    %19 = arith.addf %15, %18 : vector<4x128xf32>
    %cst_14 = arith.constant dense<0.000000e+00> : vector<64x128xf32>
    %20 = tpu.matmul %3, %19, %cst_14 {dimension_numbers = #tpu.dot_dimension_numbers<[1], [0], [0], [1], [0, 0, 1, 1], [], []>} : vector<64x4xf32>, vector<4x128xf32>, vector<64x128xf32> -> vector<64x128xf32>
    %c0_15 = arith.constant 0 : index
    %c0_16 = arith.constant 0 : index
    %21 = vector.load %arg6[%c0_15, %c0_16] : memref<64x2xf32, #tpu.memory_space<vmem>>, vector<64x1xf32>
    %22 = vector.broadcast %21 : vector<64x1xf32> to vector<64x128xf32>
    %23 = arith.addf %20, %22 : vector<64x128xf32>
    %24 = arith.negf %23 : vector<64x128xf32>
    %25 = math.exp %24 : vector<64x128xf32>
    %cst_17 = arith.constant 1.000000e+00 : f32
    %26 = vector.broadcast %cst_17 : f32 to vector<64x128xf32>
    %27 = arith.addf %26, %25 : vector<64x128xf32>
    %28 = arith.divf %26, %27 : vector<64x128xf32>
    %29 = arith.mulf %23, %28 : vector<64x128xf32>
    %cst_18 = arith.constant dense<0.000000e+00> : vector<4x128xf32>
    %30 = tpu.matmul %4, %29, %cst_18 {dimension_numbers = #tpu.dot_dimension_numbers<[1], [0], [0], [1], [0, 0, 1, 1], [], []>} : vector<4x64xf32>, vector<64x128xf32>, vector<4x128xf32> -> vector<4x128xf32>
    %31 = vector.broadcast %5 : vector<4x1xf32> to vector<4x128xf32>
    %32 = arith.addf %30, %31 : vector<4x128xf32>
    %33 = arith.subf %32, %9 : vector<4x128xf32>
    %34 = arith.mulf %33, %33 : vector<4x128xf32>
    %35 = vector.shape_cast %34 : vector<4x128xf32> to vector<1x4x128xf32>
    %cst_19 = arith.constant dense<0.000000e+00> : vector<1xf32>
    %36 = vector.multi_reduction <add>, %35, %cst_19 [1, 2] : vector<1x4x128xf32> to vector<1xf32>
    %37 = vector.shape_cast %36 : vector<1xf32> to vector<1x1x1xf32>
    %38 = vector.extract %37[0, 0, 0] : f32 from vector<1x1x1xf32>
    %cst_20 = arith.constant 0.000000e+00 : f32
    %39 = arith.addf %cst_20, %38 : f32
    %c1 = arith.constant 1 : index
    %c0_21 = arith.constant 0 : index
    %c0_22 = arith.constant 0 : index
    %40 = vector.load %arg3[%c1, %c0_21, %c0_22] : memref<2x4x128xf32, #tpu.memory_space<vmem>>, vector<1x4x128xf32>
    %41 = vector.shape_cast %40 : vector<1x4x128xf32> to vector<4x128xf32>
    %c1_23 = arith.constant 1 : index
    %c0_24 = arith.constant 0 : index
    %c0_25 = arith.constant 0 : index
    %42 = vector.load %arg4[%c1_23, %c0_24, %c0_25] : memref<2x4x128xf32, #tpu.memory_space<vmem>>, vector<1x4x128xf32>
    %43 = vector.shape_cast %42 : vector<1x4x128xf32> to vector<4x128xf32>
    %44 = arith.cmpf one, %41, %41 : vector<4x128xf32>
    %cst_26 = arith.constant 0.000000e+00 : f32
    %45 = vector.broadcast %cst_26 : f32 to vector<4x128xf32>
    %46 = arith.select %44, %45, %41 : vector<4x128xi1>, vector<4x128xf32>
    %c1_27 = arith.constant 1 : index
    %47 = memref.load %arg1[%c1_27] : memref<2xf32, #tpu.memory_space<smem>>
    %48 = vector.broadcast %47 : f32 to vector<4x128xf32>
    %49 = arith.mulf %48, %46 : vector<4x128xf32>
    %c1_28 = arith.constant 1 : index
    %50 = memref.load %arg2[%c1_28] : memref<2xf32, #tpu.memory_space<smem>>
    %51 = vector.broadcast %50 : f32 to vector<4x128xf32>
    %52 = arith.mulf %51, %43 : vector<4x128xf32>
    %53 = arith.addf %49, %52 : vector<4x128xf32>
    %cst_29 = arith.constant dense<0.000000e+00> : vector<64x128xf32>
    %54 = tpu.matmul %3, %53, %cst_29 {dimension_numbers = #tpu.dot_dimension_numbers<[1], [0], [0], [1], [0, 0, 1, 1], [], []>} : vector<64x4xf32>, vector<4x128xf32>, vector<64x128xf32> -> vector<64x128xf32>
    %c0_30 = arith.constant 0 : index
    %c1_31 = arith.constant 1 : index
    %55 = vector.load %arg6[%c0_30, %c1_31] : memref<64x2xf32, #tpu.memory_space<vmem>>, vector<64x1xf32>
    %56 = vector.broadcast %55 : vector<64x1xf32> to vector<64x128xf32>
    %57 = arith.addf %54, %56 : vector<64x128xf32>
    %58 = arith.negf %57 : vector<64x128xf32>
    %59 = math.exp %58 : vector<64x128xf32>
    %cst_32 = arith.constant 1.000000e+00 : f32
    %60 = vector.broadcast %cst_32 : f32 to vector<64x128xf32>
    %61 = arith.addf %60, %59 : vector<64x128xf32>
    %62 = arith.divf %60, %61 : vector<64x128xf32>
    %63 = arith.mulf %57, %62 : vector<64x128xf32>
    %cst_33 = arith.constant dense<0.000000e+00> : vector<4x128xf32>
    %64 = tpu.matmul %4, %63, %cst_33 {dimension_numbers = #tpu.dot_dimension_numbers<[1], [0], [0], [1], [0, 0, 1, 1], [], []>} : vector<4x64xf32>, vector<64x128xf32>, vector<4x128xf32> -> vector<4x128xf32>
    %65 = vector.broadcast %5 : vector<4x1xf32> to vector<4x128xf32>
    %66 = arith.addf %64, %65 : vector<4x128xf32>
    %67 = arith.subf %66, %43 : vector<4x128xf32>
    %68 = arith.mulf %67, %67 : vector<4x128xf32>
    %69 = vector.shape_cast %68 : vector<4x128xf32> to vector<1x4x128xf32>
    %cst_34 = arith.constant dense<0.000000e+00> : vector<1xf32>
    %70 = vector.multi_reduction <add>, %69, %cst_34 [1, 2] : vector<1x4x128xf32> to vector<1xf32>
    %71 = vector.shape_cast %70 : vector<1xf32> to vector<1x1x1xf32>
    %72 = vector.extract %71[0, 0, 0] : f32 from vector<1x1x1xf32>
    %73 = arith.addf %39, %72 : f32
    %c0_35 = arith.constant 0 : index
    %c0_36 = arith.constant 0 : index
    %74 = memref.load %arg10[%c0_35, %c0_36] : memref<1x1xf32, #tpu.memory_space<smem>>
    %75 = arith.addf %74, %73 : f32
    %c0_37 = arith.constant 0 : index
    %c0_38 = arith.constant 0 : index
    %76 = memref.load %arg10[%c0_37, %c0_38] : memref<1x1xf32, #tpu.memory_space<smem>>
    memref.store %75, %arg10[%c0_37, %c0_38] : memref<1x1xf32, #tpu.memory_space<smem>>
    %c1_i32 = arith.constant 1 : i32
    %77 = arith.cmpi eq, %arg0, %c1_i32 : i32
    %78 = arith.extui %77 : i1 to i32
    %c0_i32_39 = arith.constant 0 : i32
    %79 = arith.cmpi ne, %78, %c0_i32_39 : i32
    scf.if %79 {
      %c0_40 = arith.constant 0 : index
      %c0_41 = arith.constant 0 : index
      %80 = memref.load %arg10[%c0_40, %c0_41] : memref<1x1xf32, #tpu.memory_space<smem>>
      %c0_42 = arith.constant 0 : index
      %c0_43 = arith.constant 0 : index
      %81 = memref.load %arg9[%c0_42, %c0_43] : memref<1x1xf32, #tpu.memory_space<smem>>
      memref.store %80, %arg9[%c0_42, %c0_43] : memref<1x1xf32, #tpu.memory_space<smem>>
    } else {
    }
    return
  }
  func.func @transform_0(%arg0: i32) -> i32 {
    %c0_i32 = arith.constant 0 : i32
    %c0_i32_0 = arith.constant 0 : i32
    return %c0_i32 : i32
  }
  func.func @transform_1(%arg0: i32) -> i32 {
    %c0_i32 = arith.constant 0 : i32
    %c0_i32_0 = arith.constant 0 : i32
    return %c0_i32 : i32
  }
  func.func @transform_2(%arg0: i32) -> (i32, i32, i32) {
    %c0_i32 = arith.constant 0 : i32
    %c0_i32_0 = arith.constant 0 : i32
    %c0_i32_1 = arith.constant 0 : i32
    return %c0_i32, %c0_i32_0, %arg0 : i32, i32, i32
  }
  func.func @transform_3(%arg0: i32) -> (i32, i32, i32) {
    %c0_i32 = arith.constant 0 : i32
    %c0_i32_0 = arith.constant 0 : i32
    %c0_i32_1 = arith.constant 0 : i32
    return %c0_i32, %c0_i32_0, %arg0 : i32, i32, i32
  }
  func.func @transform_4(%arg0: i32) -> (i32, i32) {
    %c0_i32 = arith.constant 0 : i32
    %c0_i32_0 = arith.constant 0 : i32
    %c0_i32_1 = arith.constant 0 : i32
    return %c0_i32, %c0_i32_0 : i32, i32
  }
  func.func @transform_5(%arg0: i32) -> (i32, i32) {
    %c0_i32 = arith.constant 0 : i32
    %c0_i32_0 = arith.constant 0 : i32
    %c0_i32_1 = arith.constant 0 : i32
    return %c0_i32, %c0_i32_0 : i32, i32
  }
  func.func @transform_6(%arg0: i32) -> (i32, i32) {
    %c0_i32 = arith.constant 0 : i32
    %c0_i32_0 = arith.constant 0 : i32
    %c0_i32_1 = arith.constant 0 : i32
    return %c0_i32, %c0_i32_0 : i32, i32
  }
  func.func @transform_7(%arg0: i32) -> (i32, i32) {
    %c0_i32 = arith.constant 0 : i32
    %c0_i32_0 = arith.constant 0 : i32
    %c0_i32_1 = arith.constant 0 : i32
    return %c0_i32, %c0_i32_0 : i32, i32
  }
  func.func @transform_8(%arg0: i32) -> (i32, i32) {
    %c0_i32 = arith.constant 0 : i32
    %c0_i32_0 = arith.constant 0 : i32
    %c0_i32_1 = arith.constant 0 : i32
    return %c0_i32, %c0_i32_0 : i32, i32
  }
}

</mosaic_0001>

<bundles_post_ra>
// kernel: forward.21
= control target key start
LH: loop header
LB: loop body
LE: loop exit
PB: predicated region body
PF: predicated region fallthrough
CT: control target
= control target key end

     0   :  { %13 = vsyncpa [#allocation5], 0  ;;  %s1934_s0 = inlined_call_operand.vmem [shape: f32[2], index: 0, kind: input, shape index: {}]   ;;  %s1935_s1 = inlined_call_operand.vmem [shape: f32[2], index: 1, kind: input, shape index: {}]   ;;  %s1936_s2 = inlined_call_operand.vmem [shape: f32[2,4,256], index: 2, kind: input, shape index: {}]   ;;  %s1937_s3 = inlined_call_operand.vmem [shape: f32[2,4,256], index: 3, kind: input, shape index: {}]   ;;  %s1938_s4 = inlined_call_operand.vmem [shape: f32[64,4], index: 4, kind: input, shape index: {}]   ;;  %s1939_s5 = inlined_call_operand.vmem [shape: f32[64,2], index: 5, kind: input, shape index: {}]   ;;  %s1940_s6 = inlined_call_operand.vmem [shape: f32[4,64], index: 6, kind: input, shape index: {}]   ;;  %s1941_s7 = inlined_call_operand.vmem [shape: f32[4,1], index: 7, kind: input, shape index: {}]   ;;  %s1942_s8 = inlined_call_operand.hbm [shape: f32[1,1], index: 8, kind: output, shape index: {}]  }
   0x1   :  { %14 = vsyncpa [#allocation7], 0 }
   0x2   :  { %15 = vsyncpa [#allocation4], 0  ;;  %s1635_s27 = smov 0   ;;  %s1637_s28 = smov 0  }
   0x3   :  { %s1639_s29 = smov 0  }
   0x4 LB: > { %s1180_s30 = sadd.s32 4294967295, %s1579_s29   ;;  %s1652_s9 = sadd.s32 1, %s1579_s29   ;;  %s1579_s29 = sphi %s1639_s29, %s1957_s29   ;;  %s1575_s28 = sphi %s1637_s28, %s1956_s28   ;;  %s1571_s27 = sphi %s1635_s27, %s1955_s27  }
   0x5   : > { %s67_s10 = ssub.s32 %s1579_s29, %s1652_s9  ;;  %s70_s11 = sadd.s32 1, %s1575_s28 }
   0x6   : > { %p68_p0 = scmp.eq.s32.totalorder %s67_s10, 0  ;;  %p77_p1 = scmp.ne.s32.totalorder %s1575_s28, %s1571_s27 }
   0x7   : > { %p78_p2 = scmp.eq.s32.totalorder %s1579_s29, 0  ;;  %p1181_p3 = scmp.ge.s32.totalorder %s1579_s29, 1 }
   0x8   : > { %s1662_s12 = scalar_select %p68_p0, %s1575_s28, %s70_s11  }
   0x9   : > { %p1664_p4 = por %p78_p2, %p77_p1  ;;  %p225_p5 = scmp.lt.s32.totalorder %s1579_s29, 3 }
   0xa   : > { %p1671_p6 = scmp.eq.s32.totalorder %s1180_s30, 0  ;;  %s238_s18 = sshll.u32 %s1934_s0, 4  ;;  %s239_s18 = int_to_ptr.vmem [resolvable:$true] %s238_s18 }
   0xb   : > { %s1946_s13 = scalar_select %p1664_p4, 1, 0 }
   0xc   : > { %s1947_s14 = scalar_select %p1671_p6, 1, 0 }
   0xd   : > { %p1675_p7 = pnand %p1181_p3, %p225_p5  ;;  %s249_s21 = sshll.u32 %s1935_s1, 4  ;;  %s250_s21 = int_to_ptr.vmem [resolvable:$true] %s249_s21 }
   0xe   : > { %s1503_s23 = scalar_lea.vmem %s239_s18, 16  ;;  %p1511_p0 = scmp.lt.s32.totalorder %s239_s18, %s239_s18 }
   0xf   : > { %s1948_s15 = scalar_select %p1675_p7, 1, 0 }
  0x10   : > { %p1386_p8 = pneg %p1675_p7  ;;  %p1504_p10 = scmp.ne.s32.totalorder %s239_s18, %s1503_s23 }
  0x11   : > { %p1512_p1 = scmp.lt.s32.totalorder %s1503_s23, %s1503_s23 }
  0x12   : > { %p1689_p9 = pnand %p1671_p6, %p1386_p8 }
  0x13   : > { %p1513_p2 = por %p1512_p1, %p1511_p0 }
  0x14   : > { %p1505_p11 = pneg %p1689_p9 }
  0x16   : > { %p1506_p12 = pnand %p1505_p11, %p1504_p10 }
  0x18   : > { %p1507_p13 = pneg %p1506_p12 }
  0x1a   : > { %p1514_p3 = pnand %p1513_p2, %p1507_p13 }
  0x1c   : > { %1517 = shalt.err (!%p1514_p3)
}
  0x1d   : > { %s1581_s24 = smov [#allocation3]   ;;  %s1518_s25 = scalar_lea.vmem %s250_s21, 16 }
  0x1e   : > { %1389 = dma.vmem_to_smem (!%p1689_p9), %s239_s18, 16, %s1581_s24, [#allocation5]  }
  0x1f   : > { %p1519_p5 = scmp.ne.s32.totalorder %s250_s21, %s1518_s25  ;;  %p1526_p7 = scmp.lt.s32.totalorder %s250_s21, %s250_s21 }
  0x20   : > { %p1527_p4 = scmp.lt.s32.totalorder %s1518_s25, %s1518_s25 }
  0x21   : > { %p1521_p8 = pnand %p1519_p5, %p1505_p11 }
  0x22   : > { %p1528_p10 = por %p1527_p4, %p1526_p7 }
  0x23   : > { %p1522_p6 = pneg %p1521_p8 }
  0x25   : > { %p1529_p12 = pnand %p1528_p10, %p1522_p6 }
  0x27   : > { %1532 = shalt.err (!%p1529_p12)
}
  0x28   : > { %s1582_s26 = smov [#allocation6]   ;;  %p1184_p13 = scmp.ge.s32.totalorder %s1579_s29, 2 }
  0x29   : > { %1392 = dma.vmem_to_smem (!%p1689_p9), %s250_s21, 16, %s1582_s26, [#allocation7]  }
  0x2a   : > { %268 = sbr.rel (%p1184_p13) target bundleno = 65 (0x41), region = 40  ;;  %p1950_p0 = scmp.ne.s32.totalorder (!%p1184_p13), %s1946_s13, 0 }
  0x31   : > { %271 = sbr.rel (!%p1950_p0) target bundleno = 56 (0x38), region = 44  ;;  %s273_s10 = sand.u32 (%p1950_p0), 1, %s1575_s28  }
  0x32   : > { %s1186_s11 = sshll.u32 (%p1950_p0), %s1579_s29, 2  ;;  %s1185_s16 = sshll.u32 (%p1950_p0), %s273_s10, 3 }
  0x33   : > { %s277_s19 = scalar_lea.vmem (%p1950_p0), %s1936_s2, %s1186_s11  ;;  %s275_s20 = scalar_lea.vmem (%p1950_p0), [#allocation8], %s1185_s16 }
  0x34   : > { %v293_v0 = vld [vmem:[%s277_s19] sm:$0xf] (%p1950_p0)  ;;  %v295_v1 = vld [vmem:[%s277_s19 + $0x8] sm:$0xf] (%p1950_p0) }
  0x35   : > { %294 = vst [vmem:[%s275_s20] sm:$0xf] (%p1950_p0), %v293_v0  ;;  %296 = vst [vmem:[%s275_s20 + $0x4] sm:$0xf] (%p1950_p0), %v295_v1 }
  0x38 PF: > { %p1951_p4 = scmp.ne.s32.totalorder %s1946_s13, 0 }
  0x39   : > { %s325_s21 = sand.u32 (%p1951_p4), 1, %s1575_s28   ;;  %s1188_s22 = sshll.u32 (%p1951_p4), %s1579_s29, 2 }
  0x3a   : > { %323 = sbr.rel (!%p1951_p4) target bundleno = 65 (0x41), region = 85  ;;  %s1187_s23 = sshll.u32 (%p1951_p4), %s325_s21, 3 }
  0x3b   : > { %s329_s26 = scalar_lea.vmem (%p1951_p4), %s1937_s3, %s1188_s22  ;;  %s327_s10 = scalar_lea.vmem (%p1951_p4), [#allocation9], %s1187_s23 }
  0x3c   : > { %v345_v2 = vld [vmem:[%s329_s26] sm:$0xf] (%p1951_p4)  ;;  %v347_v3 = vld [vmem:[%s329_s26 + $0x8] sm:$0xf] (%p1951_p4) }
  0x3d   : > { %346 = vst [vmem:[%s327_s10] sm:$0xf] (%p1951_p4), %v345_v2  ;;  %348 = vst [vmem:[%s327_s10 + $0x4] sm:$0xf] (%p1951_p4), %v347_v3 }
  0x41 PF: > { %p1952_p6 = scmp.ne.s32.totalorder %s1948_s15, 0 }
  0x42   : > { %p1953_p7 = scmp.ne.s32.totalorder (!%p1952_p6), %s1947_s14, 0 }
  0x43   : > { %378 = sbr.rel (%p1952_p6) target bundleno = 808 (0x328), region = 126 }
  0x4a   : > { %1558 = dma.done.wait (%p1953_p7), [#allocation5], 16  }
  0x4b   : > { %1560 = vsyncadd (%p1953_p7), [#allocation5], 4294967280 }
  0x4c   : > { %1562 = dma.done.wait (%p1953_p7), [#allocation7], 16  }
  0x4d   : > { %1564 = vsyncadd (%p1953_p7), [#allocation7], 4294967280  ;;  %s389_s13 = sand.u32 1, %s1571_s27  }
  0x4e   : > { %s1192_s11 = sshll.u32 %s389_s13, 3 }
  0x4f   : > { %s391_s16 = scalar_lea.vmem [#allocation8], %s1192_s11  ;;  %s398_s17 = scalar_lea.vmem [#allocation9], %s1192_s11 }
  0x50   : > { %402 = sfence }
  0x51   : > { %v445_v4 = vld [vmem:[%s391_s16] sm:$0xf]  ;;  %s449_s15 = sld [smem:[#allocation3]]  ;;  %vm504_vm1 = vcmask 31744   ;;  %v1213_v6 = vld [vmem:[%s391_s16 + $0x4] sm:$0xf] }
  0x52   : > { %vm447_vm0 = vcmp.ne.f32.partialorder %v445_v4, %v445_v4  ;;  %s452_s18 = sld [smem:[#allocation6]]  ;;  %v1728_v5 = vld [vmem:[%s1938_s4] sm:$0xff]  ;;  %s1215_s21 = sld [smem:[#allocation3 + $0x1]]  ;;  %vm790_vm2 = vcmp.ne.f32.partialorder %v1213_v6, %v1213_v6  ;;  %v1732_v8 = vld [vmem:[%s398_s17] sm:$0xf]  ;;  %v1583_v9 = vmov 0  }
  0x53   : > { %1278 = vmatprep.mubr.msk.f32.mxu0 %vm504_vm1, %v1728_v5  ;;  %s1216_s27 = sld [smem:[#allocation6 + $0x1]]  ;;  %v448_v7 = vsel %vm447_vm0, 0.0, %v445_v4  ;;  %1434 = vset.pattern.permute.xlu0 %v1583_v9  ;;  %v456_v10 = vld [vmem:[%s1939_s5] sm:$0xff]  ;;  %v458_v11 = vld [vmem:[%s1939_s5 + $0x10] sm:$0xff]  ;;  %v791_v16 = vsel %vm790_vm2, 0.0, %v1213_v6  ;;  %v457_v17 = vld [vmem:[%s1939_s5 + $0x8] sm:$0xff] }
  0x54   : > { %1435 = vset.pattern.permute.xlu1 %v1583_v9  ;;  %466 = vperm.xlu0 %1434, %v456_v10   ;;  %v1742_v15 = vld [vmem:[%s398_s17 + $0x4] sm:$0xf]  ;;  %vm529_vm3 = vcmask 1043456   ;;  %v436_v25 = vld [vmem:[%s1938_s4 + $0x8] sm:$0xff]  ;;  %v460_v28 = vld [vmem:[%s1939_s5 + $0x20] sm:$0xff]  ;;  %v1584_v37 = vmov 1  }
  0x55   : > { %476 = vperm.xlu1 %1435, %v458_v11   ;;  %v459_v18 = vld [vmem:[%s1939_s5 + $0x18] sm:$0xff]  ;;  %v437_v27 = vld [vmem:[%s1938_s4 + $0x10] sm:$0xff]  ;;  %v461_v29 = vld [vmem:[%s1939_s5 + $0x28] sm:$0xff]  ;;  %v1585_v38 = vmov 0.0|0.0   ;;  %vm1586_vm4 = vmmov 0   ;;  %v1587_v39 = vmov 0.0  }
  0x56   : > { %v438_v30 = vld [vmem:[%s1938_s4 + $0x18] sm:$0xff]  ;;  %v439_v31 = vld [vmem:[%s1938_s4 + $0x20] sm:$0xff]  ;;  %v462_v32 = vld [vmem:[%s1939_s5 + $0x30] sm:$0xff]  ;;  %1342 = vmatprep.subr.bf16.mxu1 %v1585_v38  ;;  %1306 = vmatprep.mubr.msk.f32.mxu1 %vm1586_vm4, %v1587_v39  ;;  %vm699_vm5 = vcmask 523264   ;;  %s1588_s24 = smov 0.0   ;;  %p1898_p9 = scmp.eq.s32.totalorder %s1180_s30, 1 }
  0x57   : > { %v450_v12 = vstv %s449_s15  ;;  %v463_v33 = vld [vmem:[%s1939_s5 + $0x38] sm:$0xff]  ;;  %v440_v34 = vld [vmem:[%s1938_s4 + $0x28] sm:$0xff]  ;;  %v441_v35 = vld [vmem:[%s1938_s4 + $0x30] sm:$0xff]  ;;  %1379 = sst [smem:[#allocation2]] (%p1953_p7), %s1588_s24  ;;  %s1533_s15 = scalar_lea.hbm %s1942_s8, 16 }
  0x58   : > { %v451_v13 = vmul.f32 %v450_v12, %v448_v7  ;;  %v453_v14 = vstv %s452_s18  ;;  %v793_v20 = vstv %s1215_s21  ;;  %471 = vperm.xlu0 %1434, %v457_v17   ;;  %v442_v36 = vld [vmem:[%s1938_s4 + $0x38] sm:$0xff]  ;;  %v444_v40 = vld [vmem:[%s1941_s7] sm:$0xf]  ;;  %s1078_s25 = sld [smem:[#allocation2]]  ;;  %p1534_p11 = scmp.ne.s32.totalorder %s1942_s8, %s1533_s15 }
  0x59   : > { %v454_v19 = vmul.f32 %v453_v14, %v1732_v8  ;;  %v796_v21 = vstv %s1216_s27  ;;  %v794_v23 = vmul.f32 %v793_v20, %v791_v16  ;;  %481 = vperm.xlu1 %1435, %v459_v18   ;;  %p1539_p3 = scmp.lt.u32.totalorder %s1533_s15, %s1942_s8 }
  0x5a   : > { %v797_v24 = vmul.f32 %v1742_v15, %v796_v21  ;;  %p1535_p1 = pnand %p1534_p11, %p1898_p9 }
  0x5b   : > { %v455_v22 = vadd.f32 %v454_v19, %v451_v13 }
  0x5c   : > { %v798_v26 = vadd.f32 %v797_v24, %v794_v23  ;;  %486 = vperm.xlu0 %1434, %v460_v28   ;;  %p1536_p2 = pneg %p1535_p1 }
  0x5d   : > { %1276 = vmatprep.subr.msk.mxu0 %vm529_vm3, %v455_v22  ;;  %491 = vperm.xlu1 %1435, %v461_v29  }
  0x5e   : > { %1277 = vmatpush3.msk.msra.mxu0 %vm529_vm3, %v455_v22  ;;  %p1541_p5 = pnand %p1539_p3, %p1536_p2 }
  0x5f   : > { %1279 = vmatmul.mubr.msk.f32.vlgmr.msra.gmra.mrb[0].mxu0 %vm504_vm1, %v436_v25  ;;  %1309 = vmatprep.subr.msk.mxu0 %vm529_vm3, %v798_v26 }
  0x60   : > { %1310 = vmatpush3.msk.msra.mxu0 %vm529_vm3, %v798_v26  ;;  %1281 = vmatprep.mubr.msk.f32.mxu0 %vm504_vm1, %v437_v27 }
  0x61   : > { %496 = vperm.xlu0 %1434, %v462_v32   ;;  %501 = vperm.xlu1 %1435, %v463_v33  }
  0x63   : > { %1282 = vmatmul.mubr.msk.f32.gmra.mrb[2].mxu0 %vm504_vm1, %v438_v30 }
  0x64   : > { %1284 = vmatprep.mubr.msk.f32.mxu0 %vm504_vm1, %v439_v31 }
  0x65   : > { %1437 = vset.pattern.permute.xlu1 %v1584_v37  ;;  %1436 = vset.pattern.permute.xlu0 %v1584_v37 }
  0x66   : > { %804 = vperm.xlu1 %1437, %v457_v17   ;;  %800 = vperm.xlu0 %1436, %v456_v10  }
  0x67   : > { %1285 = vmatmul.mubr.msk.f32.gmra.mrb[4].mxu0 %vm504_vm1, %v440_v34 }
  0x68   : > { %1287 = vmatprep.mubr.msk.f32.mxu0 %vm504_vm1, %v441_v35 }
  0x6a   : > { %808 = vperm.xlu1 %1437, %v458_v11   ;;  %812 = vperm.xlu0 %1436, %v459_v18  }
  0x6b   : > { %1288 = vmatmul.mubr.msk.f32.gmra.mrb[6].mxu0 %vm504_vm1, %v442_v36 }
  0x6c   : > { %1311 = vmatprep.mubr.msk.f32.mxu0 %vm504_vm1, %v1728_v5 }
  0x6e   : > { %816 = vperm.xlu1 %1437, %v460_v28   ;;  %820 = vperm.xlu0 %1436, %v461_v29  }
  0x6f   : > { %1312 = vmatmul.mubr.msk.f32.vlgmr.msra.gmra.mrb[8].mxu0 %vm504_vm1, %v436_v25 }
  0x70   : > { %1314 = vmatprep.mubr.msk.f32.mxu0 %vm504_vm1, %v437_v27 }
  0x72   : > { %824 = vperm.xlu1 %1437, %v462_v32   ;;  %828 = vperm.xlu0 %1436, %v463_v33  }
  0x73   : > { %1315 = vmatmul.mubr.msk.f32.gmra.mrb[10].mxu0 %vm504_vm1, %v438_v30 }
  0x74   : > { %1317 = vmatprep.mubr.msk.f32.mxu0 %vm504_vm1, %v439_v31 }
  0x76   : > { %1438 = vset.pattern.permute.xlu1 %v1583_v9 }
  0x77   : > { %1318 = vmatmul.mubr.msk.f32.gmra.mrb[12].mxu0 %vm504_vm1, %v440_v34  ;;  %696 = vperm.xlu1 %1438, %v444_v40  }
  0x78   : > { %1320 = vmatprep.mubr.msk.f32.mxu0 %vm504_vm1, %v441_v35 }
  0x7b   : > { %1321 = vmatmul.mubr.msk.f32.gmra.mrb[14].mxu0 %vm504_vm1, %v442_v36 }
  0xd3   : > { %v467_v42 = vpop.permute.xlu0 %466 }
  0xd4   : > { %v477_v41 = vpop.permute.xlu1 %476 }
  0xd7   : > { %v472_v44 = vpop.permute.xlu0 %471 }
  0xd8   : > { %v482_v43 = vpop.permute.xlu1 %481 }
  0xdb   : > { %v487_v46 = vpop.permute.xlu0 %486 }
  0xdc   : > { %v492_v45 = vpop.permute.xlu1 %491 }
  0xe0   : > { %v502_v54 = vpop.permute.xlu1 %501  ;;  %v497_v57 = vpop.permute.xlu0 %496 }
  0xe5   : > { %v801_v0 = vpop.permute.xlu0 %800  ;;  %v805_v2 = vpop.permute.xlu1 %804 }
  0xe9   : > { %v813_v14 = vpop.permute.xlu0 %812  ;;  %v809_v19 = vpop.permute.xlu1 %808 }
  0xed   : > { %v821_v32 = vpop.permute.xlu0 %820  ;;  %v817_v35 = vpop.permute.xlu1 %816 }
 0x132   : > { %v1280_v47 = vpop.f32.mrb[0].mxu0 }
 0x133   : > { %v1812_v48 = vadd.f32 %v1280_v47, %v472_v44  ;;  %v599_v49 = vpop.f32.mrb[1].mxu0 }
 0x134   : > { %v1814_v50 = vadd.f32 %v599_v49, %v467_v42 }
 0x135   : > { %v1205_v51 = vmul.f32 -1.442695, %v1812_v48 }
 0x136   : > { %v1204_v52 = vmul.f32 -1.442695, %v1814_v50  ;;  %v1283_v53 = vpop.f32.mrb[2].mxu0 }
 0x137   : > { %1439 = vpow2.f32 %v1205_v51  ;;  %v1818_v55 = vadd.f32 %v1283_v53, %v482_v43  ;;  %v609_v56 = vpop.f32.mrb[3].mxu0  ;;  %v829_v53 = vpop.permute.xlu0 %828 }
 0x138   : > { %1441 = vpow2.f32 %v1204_v52  ;;  %v1820_v58 = vadd.f32 %v609_v56, %v477_v41 }
 0x139   : > { %v1207_v59 = vmul.f32 -1.442695, %v1818_v55 }
 0x13a   : > { %v1206_v60 = vmul.f32 -1.442695, %v1820_v58  ;;  %v1286_v61 = vpop.f32.mrb[4].mxu0 }
 0x13b   : > { %1443 = vpow2.f32 %v1207_v59  ;;  %v1824_v62 = vadd.f32 %v1286_v61, %v492_v45  ;;  %v619_v63 = vpop.f32.mrb[5].mxu0 }
 0x13c   : > { %1445 = vpow2.f32 %v1206_v60  ;;  %v1826_v1 = vadd.f32 %v619_v63, %v487_v46  ;;  %v825_v60 = vpop.permute.xlu1 %824 }
 0x13d   : > { %v1209_v3 = vmul.f32 -1.442695, %v1824_v62 }
 0x13e   : > { %v1208_v4 = vmul.f32 -1.442695, %v1826_v1  ;;  %v1289_v5 = vpop.f32.mrb[6].mxu0 }
 0x13f   : > { %1447 = vpow2.f32 %v1209_v3  ;;  %v1830_v6 = vadd.f32 %v1289_v5, %v502_v54  ;;  %v629_v7 = vpop.f32.mrb[7].mxu0 }
 0x140   : > { %1449 = vpow2.f32 %v1208_v4  ;;  %v1832_v9 = vadd.f32 %v629_v7, %v497_v57 }
 0x141   : > { %v1440_v10 = vpop.eup %1439  ;;  %v1211_v11 = vmul.f32 -1.442695, %v1830_v6 }
 0x142   : > { %v1442_v12 = vpop.eup %1441  ;;  %v663_v13 = vadd.f32 1.0, %v1440_v10  ;;  %v1210_v16 = vmul.f32 -1.442695, %v1832_v9  ;;  %v1313_v17 = vpop.f32.mrb[8].mxu0 }
 0x143   : > { %v662_v18 = vadd.f32 1.0, %v1442_v12  ;;  %1451 = vpow2.f32 %v1211_v11  ;;  %v1836_v20 = vadd.f32 %v1313_v17, %v805_v2  ;;  %v900_v21 = vpop.f32.mrb[9].mxu0 }
 0x144   : > { %1453 = vrcp.f32 %v663_v13  ;;  %v1838_v22 = vadd.f32 %v900_v21, %v801_v0 }
 0x145   : > { %v1444_v23 = vpop.eup %1443  ;;  %1455 = vrcp.f32 %v662_v18  ;;  %v1227_v24 = vmul.f32 -1.442695, %v1836_v20 }
 0x146   : > { %v1446_v25 = vpop.eup %1445  ;;  %v665_v26 = vadd.f32 1.0, %v1444_v23  ;;  %1457 = vpow2.f32 %v1210_v16  ;;  %v1226_v27 = vmul.f32 -1.442695, %v1838_v22  ;;  %v1316_v28 = vpop.f32.mrb[10].mxu0 }
 0x147   : > { %v664_v29 = vadd.f32 1.0, %v1446_v25  ;;  %1459 = vpow2.f32 %v1227_v24  ;;  %v1842_v30 = vadd.f32 %v1316_v28, %v813_v14  ;;  %v910_v31 = vpop.f32.mrb[11].mxu0 }
 0x148   : > { %1461 = vrcp.f32 %v665_v26  ;;  %v1844_v33 = vadd.f32 %v910_v31, %v809_v19 }
 0x149   : > { %v1448_v34 = vpop.eup %1447  ;;  %1463 = vrcp.f32 %v664_v29  ;;  %v1229_v36 = vmul.f32 -1.442695, %v1842_v30 }
 0x14a   : > { %v1450_v37 = vpop.eup %1449  ;;  %v667_v40 = vadd.f32 1.0, %v1448_v34  ;;  %1465 = vpow2.f32 %v1226_v27  ;;  %v1228_v41 = vmul.f32 -1.442695, %v1844_v33  ;;  %v1319_v42 = vpop.f32.mrb[12].mxu0 }
 0x14b   : > { %v666_v43 = vadd.f32 1.0, %v1450_v37  ;;  %1467 = vpow2.f32 %v1229_v36  ;;  %v1848_v44 = vadd.f32 %v1319_v42, %v821_v32  ;;  %v920_v45 = vpop.f32.mrb[13].mxu0 }
 0x14c   : > { %1469 = vrcp.f32 %v667_v40  ;;  %v1850_v46 = vadd.f32 %v920_v45, %v817_v35 }
 0x14d   : > { %v1452_v47 = vpop.eup %1451  ;;  %1471 = vrcp.f32 %v666_v43  ;;  %v1231_v49 = vmul.f32 -1.442695, %v1848_v44 }
 0x14e   : > { %v1454_v51 = vpop.eup %1453  ;;  %v669_v52 = vadd.f32 1.0, %v1452_v47  ;;  %1473 = vpow2.f32 %v1228_v41  ;;  %v1230_v54 = vmul.f32 -1.442695, %v1850_v46  ;;  %v1322_v56 = vpop.f32.mrb[14].mxu0 }
 0x14f   : > { %v1456_v57 = vpop.eup %1455  ;;  %v687_v59 = vmul.f32 %v1454_v51, %v1812_v48  ;;  %1475 = vpow2.f32 %v1231_v49  ;;  %v1855_v61 = vadd.f32 %v1322_v56, %v829_v53  ;;  %v930_v63 = vpop.f32.mrb[15].mxu0  ;;  %v443_v51 = vld [vmem:[%s1940_s6] sm:$0xf] }
 0x150   : > { %v1458_v0 = vpop.eup %1457  ;;  %v686_v2 = vmul.f32 %v1456_v57, %v1814_v50  ;;  %1477 = vrcp.f32 %v669_v52  ;;  %v1858_v3 = vadd.f32 %v930_v63, %v825_v60 }
 0x151   : > { %v1460_v4 = vpop.eup %1459  ;;  %v668_v5 = vadd.f32 1.0, %v1458_v0  ;;  %1479 = vpow2.f32 %v1230_v54  ;;  %v1233_v7 = vmul.f32 -1.442695, %v1855_v61 }
 0x152   : > { %v1462_v10 = vpop.eup %1461  ;;  %v964_v11 = vadd.f32 1.0, %v1460_v4  ;;  %v1232_v48 = vmul.f32 -1.442695, %v1858_v3  ;;  %v1343_v12 = vpack.c.bf16 %v687_v59, %v686_v2 }
 0x153   : > { %v1464_v13 = vpop.eup %1463  ;;  %v689_v14 = vmul.f32 %v1462_v10, %v1818_v55  ;;  %1481 = vrcp.f32 %v668_v5 }
 0x154   : > { %v1466_v16 = vpop.eup %1465  ;;  %v688_v50 = vmul.f32 %v1464_v13, %v1820_v58  ;;  %1483 = vrcp.f32 %v964_v11  ;;  %1344 = vmatpush3.bf16.msra.mxu1 %v1343_v12 }
 0x155   : > { %v1468_v17 = vpop.eup %1467  ;;  %v963_v18 = vadd.f32 1.0, %v1466_v16  ;;  %1485 = vpow2.f32 %v1233_v7  ;;  %1345 = vmatprep.subr.bf16.mxu1 %v1585_v38 }
 0x156   : > { %v1470_v19 = vpop.eup %1469  ;;  %v966_v21 = vadd.f32 1.0, %v1468_v17  ;;  %1487 = vpow2.f32 %v1232_v48  ;;  %v1346_v23 = vpack.c.bf16 %v689_v14, %v688_v50 }
 0x157   : > { %v1472_v24 = vpop.eup %1471  ;;  %v691_v25 = vmul.f32 %v1470_v19, %v1824_v62  ;;  %1489 = vrcp.f32 %v963_v18 }
 0x158   : > { %v1474_v55 = vpop.eup %1473  ;;  %v690_v26 = vmul.f32 %v1472_v24, %v1826_v1  ;;  %1491 = vrcp.f32 %v966_v21  ;;  %1347 = vmatpush3.bf16.msra.mxu1 %v1346_v23 }
 0x159   : > { %v1476_v58 = vpop.eup %1475  ;;  %v965_v27 = vadd.f32 1.0, %v1474_v55  ;;  %1348 = vmatprep.subr.bf16.mxu1 %v1585_v38 }
 0x15a   : > { %v1478_v28 = vpop.eup %1477  ;;  %v968_v29 = vadd.f32 1.0, %v1476_v58  ;;  %v1349_v31 = vpack.c.bf16 %v691_v25, %v690_v26 }
 0x15b   : > { %v1480_v32 = vpop.eup %1479  ;;  %1493 = vrcp.f32 %v965_v27  ;;  %v693_v34 = vmul.f32 %v1478_v28, %v1830_v6 }
 0x15c   : > { %1495 = vrcp.f32 %v968_v29  ;;  %v967_v35 = vadd.f32 1.0, %v1480_v32  ;;  %1350 = vmatpush3.bf16.msra.mxu1 %v1349_v31 }
 0x15d   : > { %v1482_v62 = vpop.eup %1481  ;;  %1351 = vmatprep.subr.bf16.mxu1 %v1585_v38 }
 0x15e   : > { %v1484_v1 = vpop.eup %1483  ;;  %v692_v36 = vmul.f32 %v1482_v62, %v1832_v9  ;;  %1497 = vrcp.f32 %v967_v35 }
 0x15f   : > { %v1486_v37 = vpop.eup %1485  ;;  %v988_v41 = vmul.f32 %v1484_v1, %v1836_v20 }
 0x160   : > { %v1488_v40 = vpop.eup %1487  ;;  %v970_v42 = vadd.f32 1.0, %v1486_v37  ;;  %v1352_v43 = vpack.c.bf16 %v693_v34, %v692_v36 }
 0x161   : > { %v1490_v45 = vpop.eup %1489  ;;  %v969_v47 = vadd.f32 1.0, %v1488_v40 }
 0x162   : > { %v1492_v49 = vpop.eup %1491  ;;  %v987_v6 = vmul.f32 %v1490_v45, %v1838_v22  ;;  %1499 = vrcp.f32 %v970_v42  ;;  %1353 = vmatpush3.bf16.msra.mxu1 %v1352_v43 }
 0x163   : > { %1501 = vrcp.f32 %v969_v47  ;;  %1354 = vmatprep.subr.bf16.mxu1 %v1585_v38  ;;  %v990_v20 = vmul.f32 %v1492_v49, %v1842_v30 }
 0x164   : > { %v1355_v9 = vpack.c.bf16 %v988_v41, %v987_v6 }
 0x165   : > { %v1494_v52 = vpop.eup %1493  ;;  %1307 = vmatmul.mubr.msk.f32.vlgmr.msra.gmra.mrb[0].mxu1 %vm699_vm5, %v443_v51 }
 0x166   : > { %v1496_v53 = vpop.eup %1495  ;;  %v989_v54 = vmul.f32 %v1494_v52, %v1844_v33  ;;  %1356 = vmatpush3.bf16.msra.mxu1 %v1355_v9  ;;  %1339 = vmatprep.mubr.msk.f32.mxu1 %vm1586_vm4, %v1587_v39 }
 0x167   : > { %v992_v22 = vmul.f32 %v1496_v53, %v1848_v44  ;;  %1357 = vmatprep.subr.bf16.mxu1 %v1585_v38  ;;  %v697_v44 = vpop.permute.xlu1 %696 }
 0x168   : > { %v1498_v56 = vpop.eup %1497  ;;  %v1358_v57 = vpack.c.bf16 %v990_v20, %v989_v54 }
 0x169   : > { %v991_v59 = vmul.f32 %v1498_v56, %v1850_v46 }
 0x16a   : > { %1359 = vmatpush3.bf16.msra.mxu1 %v1358_v57 }
 0x16b   : > { %v1361_v30 = vpack.c.bf16 %v992_v22, %v991_v59  ;;  %1360 = vmatprep.subr.bf16.mxu1 %v1585_v38 }
 0x16c   : > { %v1500_v60 = vpop.eup %1499 }
 0x16d   : > { %v1502_v63 = vpop.eup %1501  ;;  %v994_v33 = vmul.f32 %v1500_v60, %v1855_v61 }
 0x16e   : > { %v993_v0 = vmul.f32 %v1502_v63, %v1858_v3  ;;  %1362 = vmatpush3.bf16.msra.mxu1 %v1361_v30 }
 0x16f   : > { %1363 = vmatprep.subr.bf16.mxu1 %v1585_v38 }
 0x170   : > { %v1364_v39 = vpack.c.bf16 %v994_v33, %v993_v0 }
 0x172   : > { %1365 = vmatpush3.bf16.msra.mxu1 %v1364_v39 }
 0x175   : > { %1340 = vmatmul.mubr.msk.f32.vlgmr.msra.gmra.mrb[2].mxu1 %vm699_vm5, %v443_v51 }
 0x238   : > { %v769_v46 = vpop.f32.mrb[0].mxu1 }
 0x239   : > { %v770_v2 = vadd.f32 %v769_v46, %v697_v44  ;;  %v1308_v4 = vpop.f32.mrb[1].mxu1 }
 0x23b   : > { %v773_v5 = vsub.f32 %v770_v2, %v1732_v8 }
 0x23d   : > { %v774_v7 = vmul.f32 %v773_v5, %v773_v5 }
 0x23f   : > { %v775_v10 = vsel %vm529_vm3, %v774_v7, 0.0 }
 0x240   : > { %776 = vadd.xlane.f32.xlu0 %v775_v10 }
 0x248   : > { %v1061_v61 = vpop.f32.mrb[2].mxu1 }
 0x249   : > { %v1062_v3 = vadd.f32 %v1061_v61, %v697_v44  ;;  %v1341_v11 = vpop.f32.mrb[3].mxu1 }
 0x24b   : > { %v1065_v38 = vsub.f32 %v1062_v3, %v1742_v15 }
 0x24d   : > { %v1066_v48 = vmul.f32 %v1065_v38, %v1065_v38 }
 0x24f   : > { %v1067_v12 = vsel %vm529_vm3, %v1066_v48, 0.0 }
 0x250   : > { %1068 = vadd.xlane.f32.xlu1 %v1067_v12 }
 0x2cd   : > { %v777_v13 = vpop.xlane.xlu0 %776 }
 0x2ce   : > { %v778_v14 = vrot.slane %v777_v13, 4 }
 0x2d0   : > { %v779_v16 = vadd.f32 %v778_v14, %v777_v13 }
 0x2d2   : > { %v780_v8 = vrot.slane %v779_v16, 2 }
 0x2d4   : > { %v781_v50 = vadd.f32 %v780_v8, %v779_v16 }
 0x2d6   : > { %v782_v17 = vrot.slane %v781_v50, 1 }
 0x2d8   : > { %v783_v18 = vadd.f32 %v782_v17, %v781_v50 }
 0x2da   : > { %1366 = vpush %v783_v18 }
 0x2dd   : > { %v1069_v19 = vpop.xlane.xlu1 %1068 }
 0x2de   : > { %v1070_v21 = vrot.slane %v1069_v19, 4 }
 0x2e0   : > { %v1071_v23 = vadd.f32 %v1070_v21, %v1069_v19 }
 0x2e2   : > { %v1072_v15 = vrot.slane %v1071_v23, 2 }
 0x2e4   : > { %v1073_v24 = vadd.f32 %v1072_v15, %v1071_v23 }
 0x2e6   : > { %v1074_v25 = vrot.slane %v1073_v24, 1 }
 0x2e8   : > { %v1075_v55 = vadd.f32 %v1074_v25, %v1073_v24 }
 0x2ea   : > { %1368 = vpush %v1075_v55 }
 0x30b   : > { %s1367_s14 = spop %1366 }
 0x31b   : > { %s1369_s26 = spop %1368 }
 0x31c   : > { %s1077_s10 = sadd.f32 %s1369_s26, %s1367_s14 }
 0x31e   : > { %s1079_s11 = sadd.f32 %s1078_s25, %s1077_s10 }
 0x320   : > { %1081 = sst [smem:[#allocation2]] %s1079_s11 }
 0x321   : > { %1381 = sst [smem:[#allocation10]] (%p1898_p9), %s1079_s11 }
 0x322   : > { %1544 = shalt.err (!%p1541_p5)
}
 0x323   : > { %s1589_s20 = smov [#allocation10]  }
 0x324   : > { %1383 = dma.smem_to_hbm (%p1898_p9), %s1589_s20, 16, %s1942_s8, [#allocation4]  }
 0x325   : > { %1566 = dma.done.wait (%p1898_p9), [#allocation4], 16  }
 0x326   : > { %1568 = vsyncadd (%p1898_p9), [#allocation4], 4294967280 }
 0x327   : > { %1102 = sfence }
 0x328 PF: > { %p18_p8 = scmp.ge.s32.totalorder %s1652_s9, 4   ;;  %s1955_s27 = smov %s1575_s28 }
 0x329   : > { %s1956_s28 = smov %s1662_s12  ;;  %s1957_s29 = smov %s1652_s9 }
 0x32a   :  { %20 = sbr.rel (!%p18_p8) target bundleno = 4 (0x4), region = 196 }
 0x331   :  { %1108 = vsyncpa [#allocation4], 1 }
 0x332   :  { %1110 = vsyncpa [#allocation4 + $0x1], 1 }
 0x333   :  { %1111 = vsyncpa [#allocation5], 1 }
 0x334   :  { %1113 = vsyncpa [#allocation5 + $0x1], 1 }
 0x335   :  { %1114 = vsyncpa [#allocation7], 1 }

</bundles_post_ra>
